<compile_context>
chip_gen: v7x
topology: tpu7x:2x2x1
jax: 0.10.0
libtpu: 0.0.40
codegen_flags: <defaults>
</compile_context>

<pallas_src>
import functools

import jax
import jax.numpy as jnp
from jax.experimental import pallas as pl
from jax.experimental.pallas import tpu as pltpu


def basic_block_kernel(x_ref, w1_ref, b1_ref, w2_ref, b2_ref, o_ref, *, img_h):
    """Fused BasicBlock on a stack of images in lane-dense (rows, W*C) layout.

    x_ref  : (Mb, W*Cin)        f32   Mb = images_per_block * H rows
    w1_ref : (3*W*Cin,  W*Cout) bf16  conv1 expanded weight (kw taps, horizontal
                                      zero-padding and BN1 scale folded in; kh-major)
    b1_ref : (1, W*Cout)        f32   BN1 bias (beta - mean*scale), tiled over W
    w2_ref : (3*W*Cout, W*Cout) bf16  conv2 expanded weight (BN2 folded)
    b2_ref : (1, W*Cout)        f32
    o_ref  : (Mb, W*Cout)       f32
    """
    x = x_ref[...]                      # (Mb, W*Cin) f32
    m = x.shape[0]

    # Vertical-tap boundary masks, computed once and reused by both convs.
    # row % H == 0 / H-1 marks the first/last row of each image inside the
    # stacked block (3x3 conv with padding=1 -> out-of-image rows are zero).
    row = jax.lax.broadcasted_iota(jnp.int32, (m, 1), 0)
    row_in_img = row % img_h
    mask_up = (row_in_img != 0).astype(jnp.float32)
    mask_down = (row_in_img != img_h - 1).astype(jnp.float32)

    def conv3x3(inp, w_ref, b_row):
        # Vertical (kh) shifts via XLU rolls + f32 mask multiplies, then a
        # single K = 3*W*Cin MXU matmul in bf16 with f32 accumulation
        # (kw taps + horizontal padding already folded into the weight).
        up = (pltpu.roll(inp, shift=1, axis=0) * mask_up).astype(jnp.bfloat16)
        down = (pltpu.roll(inp, shift=m - 1, axis=0) * mask_down).astype(jnp.bfloat16)
        lhs = jnp.concatenate([up, inp.astype(jnp.bfloat16), down], axis=-1)
        acc = jnp.dot(lhs, w_ref[...], preferred_element_type=jnp.float32)
        return acc + b_row

    # conv1 (3x3, pad=1, stride=1) + folded BN1 + ReLU
    out1 = jnp.maximum(conv3x3(x, w1_ref, b1_ref[...]), 0.0)
    # Dropout2d: identity in eval mode.
    # TODO(synk): training-mode Dropout2d (stochastic channel masking) not modeled.

    # conv2 (3x3, pad=1, stride=1) + folded BN2, residual add, ReLU
    out2 = conv3x3(out1, w2_ref, b2_ref[...])
    o_ref[...] = jnp.maximum(out2 + x, 0.0).astype(o_ref.dtype)


@functools.partial(jax.jit, static_argnames=("img_h", "num_splits"))
def basic_block_forward_rows(x_rows, w1e, b1t, w2e, b2t, *, img_h, num_splits=1):
    """Canonical lane-dense entry point: (N*H, W*Cin) f32 -> (N*H, W*Cout) f32.

    No layout shuffles here -- chained blocks keep activations in this format.
    `num_splits` controls the leading grid axis (per-TensorCore split on v7x);
    each grid block must contain whole images.
    """
    m_total, wc_in = x_rows.shape
    wc_out = w1e.shape[-1]
    assert m_total % num_splits == 0
    mb = m_total // num_splits
    assert mb % img_h == 0, "each grid block must contain whole images"
    assert mb % 8 == 0 and wc_in % 128 == 0 and wc_out % 128 == 0

    kernel = functools.partial(basic_block_kernel, img_h=img_h)
    return pl.pallas_call(
        kernel,
        out_shape=jax.ShapeDtypeStruct((m_total, wc_out), x_rows.dtype),
        grid=(num_splits,),
        in_specs=[
            pl.BlockSpec((mb, wc_in), lambda i: (i, 0)),
            pl.BlockSpec(w1e.shape, lambda i: (0, 0)),
            pl.BlockSpec((1, wc_out), lambda i: (0, 0)),
            pl.BlockSpec(w2e.shape, lambda i: (0, 0)),
            pl.BlockSpec((1, wc_out), lambda i: (0, 0)),
        ],
        out_specs=pl.BlockSpec((mb, wc_out), lambda i: (i, 0)),
        compiler_params=pltpu.CompilerParams(
            dimension_semantics=("parallel",)),
    )(x_rows, w1e, b1t, w2e, b2t)


# ----------------------------------------------------------------------------
# Layout helpers (used once outside the kernel, not per block call).
# ----------------------------------------------------------------------------

def nchw_to_rows(x_nchw):
    n, c, h, w = x_nchw.shape
    return jnp.transpose(x_nchw, (0, 2, 3, 1)).reshape(n * h, w * c)


def rows_to_nchw(rows, n, h, w, c):
    return jnp.transpose(rows.reshape(n, h, w, c), (0, 3, 1, 2))


# ----------------------------------------------------------------------------
# Parameter preparation glue (runs once, outside the kernel).
# ----------------------------------------------------------------------------

def fold_bn(w_oihw, gamma, beta, running_mean, running_var, eps=1e-5):
    """Fold inference-mode BatchNorm2d into conv weights/bias.

    w_oihw: (Cout, Cin, 3, 3) -> (w_hwio folded (3,3,Cin,Cout), bias (Cout,))
    """
    scale = gamma / jnp.sqrt(running_var + eps)            # (Cout,)
    w_hwio = jnp.transpose(w_oihw, (2, 3, 1, 0))            # (3,3,Cin,Cout)
    w_folded = w_hwio * scale[None, None, None, :]
    bias = beta - running_mean * scale
    return w_folded, bias


def expand_conv_weight(w_hwio, width):
    """Fold kw taps + horizontal zero-padding of a 3x3 conv into the weight.

    w_hwio: (3, 3, Cin, Cout) -> (3*W*Cin, W*Cout), kh-major along K, with
      out[kh*W*Cin + w_in*Cin + ci, w_out*Cout + co] = w[kh, w_in - w_out + 1, ci, co]
    (zero where the kw index falls outside [0, 3), implementing padding=1).
    The kh-major K layout matches the kernel's concat([up, center, down]) lhs.
    """
    kh3, kw3, cin, cout = w_hwio.shape
    w_in = jnp.arange(width)[:, None]        # (W, 1)
    w_out = jnp.arange(width)[None, :]       # (1, W)
    kw = w_in - w_out + 1                    # (W, W)
    valid = (kw >= 0) & (kw < kw3)
    kw_c = jnp.clip(kw, 0, kw3 - 1)
    e = w_hwio[:, kw_c, :, :]                                   # (3, W, W, Cin, Cout)
    e = e * valid[None, :, :, None, None].astype(w_hwio.dtype)
    e = jnp.transpose(e, (0, 1, 3, 2, 4))                       # (3, W_in, Cin, W_out, Cout)
    return e.reshape(kh3 * width * cin, width * cout)


def tile_bias(bias, width):
    """(Cout,) -> (1, W*Cout) so that index w*Cout + co picks bias[co]."""
    return jnp.tile(bias, width).reshape(1, width * bias.shape[0])


def reference_forward_nchw(x_nchw, w1_hwio, b1, w2_hwio, b2):
    """Pure-JAX f32 reference (lax conv) for correctness checking."""
    x = jnp.transpose(x_nchw, (0, 2, 3, 1))
    dn = ('NHWC', 'HWIO', 'NHWC')
    out = jax.lax.conv_general_dilated(x, w1_hwio, (1, 1), 'SAME',
                                       dimension_numbers=dn) + b1
    out = jnp.maximum(out, 0.0)
    out = jax.lax.conv_general_dilated(out, w2_hwio, (1, 1), 'SAME',
                                       dimension_numbers=dn) + b2
    out = jnp.maximum(out + x, 0.0)
    return jnp.transpose(out, (0, 3, 1, 2))


if __name__ == "__main__":
    key = jax.random.PRNGKey(0)
    (k_x, k_w1, k_w2, k_g1, k_b1, k_m1, k_v1,
     k_g2, k_b2, k_m2, k_v2) = jax.random.split(key, 11)

    # Small shapes consistent with the module: BasicBlock(8, 8, stride=1).
    # W*C = 128 lanes -> exactly one lane-dense vreg column.
    N, C, H, W = 2, 8, 16, 16
    Cout = C  # stride=1, downsample=None => in_channels == out_channels

    x = jax.random.normal(k_x, (N, C, H, W), jnp.float32)

    # conv weights in PyTorch layout (Cout, Cin, 3, 3), no bias
    w1 = jax.random.normal(k_w1, (Cout, C, 3, 3), jnp.float32) * 0.1
    w2 = jax.random.normal(k_w2, (Cout, Cout, 3, 3), jnp.float32) * 0.1

    # BatchNorm2d parameters / running stats (deterministic, inference mode)
    gamma1 = 1.0 + 0.1 * jax.random.normal(k_g1, (Cout,), jnp.float32)
    beta1 = 0.1 * jax.random.normal(k_b1, (Cout,), jnp.float32)
    mean1 = 0.1 * jax.random.normal(k_m1, (Cout,), jnp.float32)
    var1 = jnp.abs(1.0 + 0.1 * jax.random.normal(k_v1, (Cout,), jnp.float32))

    gamma2 = 1.0 + 0.1 * jax.random.normal(k_g2, (Cout,), jnp.float32)
    beta2 = 0.1 * jax.random.normal(k_b2, (Cout,), jnp.float32)
    mean2 = 0.1 * jax.random.normal(k_m2, (Cout,), jnp.float32)
    var2 = jnp.abs(1.0 + 0.1 * jax.random.normal(k_v2, (Cout,), jnp.float32))

    # Fold BN into conv weights, fold kw taps + horizontal padding into the
    # expanded (3*W*Cin, W*Cout) weight, quantize MXU operands to bf16 (done
    # once, outside the kernel).  Biases stay f32.
    w1f, b1 = fold_bn(w1, gamma1, beta1, mean1, var1)
    w2f, b2 = fold_bn(w2, gamma2, beta2, mean2, var2)
    w1e = expand_conv_weight(w1f, W).astype(jnp.bfloat16)   # (3*W*Cin,  W*Cout)
    w2e = expand_conv_weight(w2f, W).astype(jnp.bfloat16)   # (3*W*Cout, W*Cout)
    b1t = tile_bias(b1, W)                                   # (1, W*Cout)
    b2t = tile_bias(b2, W)                                   # (1, W*Cout)

    # Lane-dense layout conversion happens ONCE outside the kernel call.
    x_rows = nchw_to_rows(x)                                 # (N*H, W*C)

    # Single large-M grid step for small batches; split per TensorCore (v7x)
    # only once each core gets at least 2 images' worth of rows.
    num_splits = 2 if (N % 2 == 0 and N >= 4) else 1

    out_rows = basic_block_forward_rows(x_rows, w1e, b1t, w2e, b2t,
                                        img_h=H, num_splits=num_splits)
    out_rows = jax.block_until_ready(out_rows)
    out = rows_to_nchw(out_rows, N, H, W, Cout)

    # Reference with the same bf16-rounded weights (cast back to f32) so the
    # check isolates the kernel's activation-rounding error; tolerance reflects
    # bf16 MXU inputs with f32 accumulation.
    w1q = w1f.astype(jnp.bfloat16).astype(jnp.float32)
    w2q = w2f.astype(jnp.bfloat16).astype(jnp.float32)
    ref = reference_forward_nchw(x, w1q, b1, w2q, b2)

    assert out.shape == (N, Cout, H, W)
    max_err = float(jnp.max(jnp.abs(out - ref)))
    assert jnp.allclose(out, ref, atol=2e-2, rtol=2e-2), max_err

    print("KERNEL_OK")
</pallas_src>

<mosaic_0001>
module attributes {stable_mosaic.version = 11 : i64} {
  func.func @basic_block_kernel(%arg0: i32, %arg1: memref<32x128xf32, #tpu.memory_space<vmem>>, %arg2: memref<384x128xbf16, #tpu.memory_space<vmem>>, %arg3: memref<1x128xf32, #tpu.memory_space<vmem>>, %arg4: memref<384x128xbf16, #tpu.memory_space<vmem>>, %arg5: memref<1x128xf32, #tpu.memory_space<vmem>>, %arg6: memref<32x128xf32, #tpu.memory_space<vmem>>) attributes {dimension_semantics = [#tpu.dimension_semantics<parallel>], iteration_bounds = array<i64: 1>, scalar_prefetch = 0 : i64, scratch_operands = 0 : i64, tpu.core_type = #tpu.core_type<tc>, window_params = [{transform_indices = @transform_0, window_bounds = array<i64: 32, 128>}, {pipeline_mode = #tpu.pipeline_mode<synchronous>, transform_indices = @transform_1, window_bounds = array<i64: 384, 128>}, {pipeline_mode = #tpu.pipeline_mode<synchronous>, transform_indices = @transform_2, window_bounds = array<i64: 1, 128>}, {pipeline_mode = #tpu.pipeline_mode<synchronous>, transform_indices = @transform_3, window_bounds = array<i64: 384, 128>}, {pipeline_mode = #tpu.pipeline_mode<synchronous>, transform_indices = @transform_4, window_bounds = array<i64: 1, 128>}, {transform_indices = @transform_5, window_bounds = array<i64: 32, 128>}]} {
    %c0 = arith.constant 0 : index
    %c0_0 = arith.constant 0 : index
    %0 = vector.load %arg1[%c0, %c0_0] : memref<32x128xf32, #tpu.memory_space<vmem>>, vector<32x128xf32>
    %1 = tpu.iota {dimensions = array<i32: 0>} : vector<32x1xi32>
    %c16_i32 = arith.constant 16 : i32
    %c0_i32 = arith.constant 0 : i32
    %2 = arith.cmpi eq, %c16_i32, %c0_i32 : i32
    %c1_i32 = arith.constant 1 : i32
    %3 = arith.select %2, %c1_i32, %c16_i32 : i32
    %4 = vector.broadcast %3 : i32 to vector<32x1xi32>
    %5 = arith.remsi %1, %4 : vector<32x1xi32>
    %c0_i32_1 = arith.constant 0 : i32
    %6 = vector.broadcast %c0_i32_1 : i32 to vector<32x1xi32>
    %7 = arith.cmpi ne, %5, %6 : vector<32x1xi32>
    %c0_i32_2 = arith.constant 0 : i32
    %8 = vector.broadcast %c0_i32_2 : i32 to vector<32x1xi32>
    %9 = arith.cmpi slt, %5, %8 : vector<32x1xi32>
    %c0_i32_3 = arith.constant 0 : i32
    %10 = arith.cmpi slt, %3, %c0_i32_3 : i32
    %11 = vector.broadcast %10 : i1 to vector<32x1xi1>
    %12 = vector.broadcast %11 : vector<32x1xi1> to vector<32x1xi1>
    %13 = arith.xori %9, %12 : vector<32x1xi1>
    %14 = arith.andi %13, %7 : vector<32x1xi1>
    %15 = vector.broadcast %3 : i32 to vector<32x1xi32>
    %16 = arith.addi %5, %15 : vector<32x1xi32>
    %17 = arith.select %14, %16, %5 : vector<32x1xi1>, vector<32x1xi32>
    %c0_i32_4 = arith.constant 0 : i32
    %18 = vector.broadcast %c0_i32_4 : i32 to vector<32x1xi32>
    %19 = arith.cmpi ne, %17, %18 : vector<32x1xi32>
    %20 = arith.extui %19 : vector<32x1xi1> to vector<32x1xi32>
    %21 = arith.sitofp %20 : vector<32x1xi32> to vector<32x1xf32>
    %c15_i32 = arith.constant 15 : i32
    %22 = vector.broadcast %c15_i32 : i32 to vector<32x1xi32>
    %23 = arith.cmpi ne, %17, %22 : vector<32x1xi32>
    %24 = arith.extui %23 : vector<32x1xi1> to vector<32x1xi32>
    %25 = arith.sitofp %24 : vector<32x1xi32> to vector<32x1xf32>
    %c0_5 = arith.constant 0 : index
    %c0_6 = arith.constant 0 : index
    %26 = vector.load %arg3[%c0_5, %c0_6] : memref<1x128xf32, #tpu.memory_space<vmem>>, vector<1x128xf32>
    %c1_i32_7 = arith.constant 1 : i32
    %27 = tpu.dynamic_rotate %0 by %c1_i32_7 dim 0 : vector<32x128xf32>, i32 -> vector<32x128xf32>
    %28 = vector.broadcast %21 : vector<32x1xf32> to vector<32x128xf32>
    %29 = arith.mulf %27, %28 : vector<32x128xf32>
    %30 = arith.truncf %29 : vector<32x128xf32> to vector<32x128xbf16>
    %c31_i32 = arith.constant 31 : i32
    %31 = tpu.dynamic_rotate %0 by %c31_i32 dim 0 : vector<32x128xf32>, i32 -> vector<32x128xf32>
    %32 = vector.broadcast %25 : vector<32x1xf32> to vector<32x128xf32>
    %33 = arith.mulf %31, %32 : vector<32x128xf32>
    %34 = arith.truncf %33 : vector<32x128xf32> to vector<32x128xbf16>
    %35 = arith.truncf %0 : vector<32x128xf32> to vector<32x128xbf16>
    %36 = tpu.concatenate %30, %35, %34 in 1 : vector<32x128xbf16>, vector<32x128xbf16>, vector<32x128xbf16> -> vector<32x384xbf16>
    %c0_8 = arith.constant 0 : index
    %c0_9 = arith.constant 0 : index
    %37 = vector.load %arg2[%c0_8, %c0_9] : memref<384x128xbf16, #tpu.memory_space<vmem>>, vector<384x128xbf16>
    %cst = arith.constant dense<0.000000e+00> : vector<32x128xf32>
    %38 = tpu.matmul %36, %37, %cst {dimension_numbers = #tpu.dot_dimension_numbers<[1], [0], [0], [1], [0, 0, 1, 1], [], []>} : vector<32x384xbf16>, vector<384x128xbf16>, vector<32x128xf32> -> vector<32x128xf32>
    %39 = vector.broadcast %26 : vector<1x128xf32> to vector<32x128xf32>
    %40 = arith.addf %38, %39 : vector<32x128xf32>
    %cst_10 = arith.constant 0.000000e+00 : f32
    %41 = vector.broadcast %cst_10 : f32 to vector<32x128xf32>
    %42 = arith.maximumf %40, %41 : vector<32x128xf32>
    %c0_11 = arith.constant 0 : index
    %c0_12 = arith.constant 0 : index
    %43 = vector.load %arg5[%c0_11, %c0_12] : memref<1x128xf32, #tpu.memory_space<vmem>>, vector<1x128xf32>
    %c1_i32_13 = arith.constant 1 : i32
    %44 = tpu.dynamic_rotate %42 by %c1_i32_13 dim 0 : vector<32x128xf32>, i32 -> vector<32x128xf32>
    %45 = vector.broadcast %21 : vector<32x1xf32> to vector<32x128xf32>
    %46 = arith.mulf %44, %45 : vector<32x128xf32>
    %47 = arith.truncf %46 : vector<32x128xf32> to vector<32x128xbf16>
    %c31_i32_14 = arith.constant 31 : i32
    %48 = tpu.dynamic_rotate %42 by %c31_i32_14 dim 0 : vector<32x128xf32>, i32 -> vector<32x128xf32>
    %49 = vector.broadcast %25 : vector<32x1xf32> to vector<32x128xf32>
    %50 = arith.mulf %48, %49 : vector<32x128xf32>
    %51 = arith.truncf %50 : vector<32x128xf32> to vector<32x128xbf16>
    %52 = arith.truncf %42 : vector<32x128xf32> to vector<32x128xbf16>
    %53 = tpu.concatenate %47, %52, %51 in 1 : vector<32x128xbf16>, vector<32x128xbf16>, vector<32x128xbf16> -> vector<32x384xbf16>
    %c0_15 = arith.constant 0 : index
    %c0_16 = arith.constant 0 : index
    %54 = vector.load %arg4[%c0_15, %c0_16] : memref<384x128xbf16, #tpu.memory_space<vmem>>, vector<384x128xbf16>
    %cst_17 = arith.constant dense<0.000000e+00> : vector<32x128xf32>
    %55 = tpu.matmul %53, %54, %cst_17 {dimension_numbers = #tpu.dot_dimension_numbers<[1], [0], [0], [1], [0, 0, 1, 1], [], []>} : vector<32x384xbf16>, vector<384x128xbf16>, vector<32x128xf32> -> vector<32x128xf32>
    %56 = vector.broadcast %43 : vector<1x128xf32> to vector<32x128xf32>
    %57 = arith.addf %55, %56 : vector<32x128xf32>
    %58 = arith.addf %57, %0 : vector<32x128xf32>
    %cst_18 = arith.constant 0.000000e+00 : f32
    %59 = vector.broadcast %cst_18 : f32 to vector<32x128xf32>
    %60 = arith.maximumf %58, %59 : vector<32x128xf32>
    %c0_19 = arith.constant 0 : index
    %c0_20 = arith.constant 0 : index
    %61 = vector.load %arg6[%c0_19, %c0_20] : memref<32x128xf32, #tpu.memory_space<vmem>>, vector<32x128xf32>
    tpu.vector_store %arg6[%c0_19, %c0_20], %60 {strides = array<i32>} : memref<32x128xf32, #tpu.memory_space<vmem>>, vector<32x128xf32>,
    return
  }
  func.func @transform_0(%arg0: i32) -> (i32, i32) {
    %c0_i32 = arith.constant 0 : i32
    %c0_i32_0 = arith.constant 0 : i32
    return %arg0, %c0_i32 : i32, i32
  }
  func.func @transform_1(%arg0: i32) -> (i32, i32) {
    %c0_i32 = arith.constant 0 : i32
    %c0_i32_0 = arith.constant 0 : i32
    %c0_i32_1 = arith.constant 0 : i32
    return %c0_i32, %c0_i32_0 : i32, i32
  }
  func.func @transform_2(%arg0: i32) -> (i32, i32) {
    %c0_i32 = arith.constant 0 : i32
    %c0_i32_0 = arith.constant 0 : i32
    %c0_i32_1 = arith.constant 0 : i32
    return %c0_i32, %c0_i32_0 : i32, i32
  }
  func.func @transform_3(%arg0: i32) -> (i32, i32) {
    %c0_i32 = arith.constant 0 : i32
    %c0_i32_0 = arith.constant 0 : i32
    %c0_i32_1 = arith.constant 0 : i32
    return %c0_i32, %c0_i32_0 : i32, i32
  }
  func.func @transform_4(%arg0: i32) -> (i32, i32) {
    %c0_i32 = arith.constant 0 : i32
    %c0_i32_0 = arith.constant 0 : i32
    %c0_i32_1 = arith.constant 0 : i32
    return %c0_i32, %c0_i32_0 : i32, i32
  }
  func.func @transform_5(%arg0: i32) -> (i32, i32) {
    %c0_i32 = arith.constant 0 : i32
    %c0_i32_0 = arith.constant 0 : i32
    return %arg0, %c0_i32 : i32, i32
  }
}

</mosaic_0001>

<bundles_post_ra>
// kernel: basic_block_forward_rows.1
= control target key start
LH: loop header
LB: loop body
LE: loop exit
PB: predicated region body
PF: predicated region fallthrough
CT: control target
= control target key end

     0   :  { %10 = vsyncpa [#allocation3], 0  ;;  %s1358_s0 = inlined_call_operand.hbm [shape: f32[32,128], index: 0, kind: input, shape index: {}]   ;;  %s1359_s1 = inlined_call_operand.hbm [shape: bf16[384,128], index: 1, kind: input, shape index: {}]   ;;  %s1360_s2 = inlined_call_operand.vmem [shape: f32[1,128], index: 2, kind: input, shape index: {}]   ;;  %s1361_s3 = inlined_call_operand.hbm [shape: bf16[384,128], index: 3, kind: input, shape index: {}]   ;;  %s1362_s4 = inlined_call_operand.vmem [shape: f32[1,128], index: 4, kind: input, shape index: {}]   ;;  %s1363_s5 = inlined_call_operand.hbm [shape: f32[32,128], index: 5, kind: output, shape index: {}]  }
   0x1   :  { %11 = vsyncpa [#allocation6], 0 }
   0x2   :  { %12 = vsyncpa [#allocation4], 0  ;;  %s1155_s18 = smov [#allocation5]   ;;  %s1061_s22 = scalar_lea.hbm %s1359_s1, 3072 }
   0x3   :  { %s30_s19 = sshll.u32 %s1155_s18, 4  ;;  %p1062_p0 = scmp.ne.s32.totalorder %s1359_s1, %s1061_s22  ;;  %s31_s19 = int_to_ptr.vmem [resolvable:$true] %s30_s19 }
   0x4   :  { %p1065_p1 = scmp.lt.u32.totalorder %s1061_s22, %s1359_s1 }
   0x6   :  { %p1067_p2 = pnand %p1065_p1, %p1062_p0 }
   0x8   :  { %1070 = shalt.err (!%p1067_p2)
}
   0x9   :  { %s1071_s27 = scalar_lea.vmem %s31_s19, 3072  ;;  %p1076_p4 = scmp.lt.s32.totalorder %s31_s19, %s31_s19 }
   0xa   :  { %p1072_p3 = scmp.ne.s32.totalorder %s31_s19, %s1071_s27  ;;  %p1077_p5 = scmp.lt.s32.totalorder %s1071_s27, %s1071_s27 }
   0xc   :  { %p1078_p6 = por %p1077_p5, %p1076_p4 }
   0xe   :  { %p1079_p7 = pnand %p1078_p6, %p1072_p3 }
  0x10   :  { %1082 = shalt.err (!%p1079_p7)
}
  0x11   :  { %s1156_s28 = smov 64   ;;  %s1157_s29 = smov 4  }
  0x12   :  { %36 = dma.hbm_to_vmem [thread:$0]  %s1359_s1, 3072, %s31_s19, [#allocation6], %s1156_s28, %s1156_s28, %s1157_s29  }
  0x13   :  { %s1158_s7 = smov [#allocation2]   ;;  %s1083_s11 = scalar_lea.hbm %s1358_s0, 512 }
  0x14   :  { %s18_s8 = sshll.u32 %s1158_s7, 4  ;;  %p1084_p8 = scmp.ne.s32.totalorder %s1358_s0, %s1083_s11  ;;  %s19_s8 = int_to_ptr.vmem [resolvable:$true] %s18_s8 }
  0x15   :  { %p1087_p9 = scmp.lt.u32.totalorder %s1083_s11, %s1358_s0 }
  0x17   :  { %p1089_p10 = pnand %p1087_p9, %p1084_p8 }
  0x19   :  { %1092 = shalt.err (!%p1089_p10)
}
  0x1a   :  { %s1093_s16 = scalar_lea.vmem %s19_s8, 512  ;;  %p1098_p12 = scmp.lt.s32.totalorder %s19_s8, %s19_s8 }
  0x1b   :  { %p1094_p11 = scmp.ne.s32.totalorder %s19_s8, %s1093_s16  ;;  %p1099_p13 = scmp.lt.s32.totalorder %s1093_s16, %s1093_s16 }
  0x1d   :  { %p1100_p0 = por %p1099_p13, %p1098_p12 }
  0x1f   :  { %p1101_p1 = pnand %p1100_p0, %p1094_p11 }
  0x21   :  { %1104 = shalt.err (!%p1101_p1)
}
  0x22   :  { %s1159_s1 = smov 128   ;;  %s1160_s17 = smov 8  }
  0x23   :  { %24 = dma.hbm_to_vmem [thread:$0]  %s1358_s0, 512, %s19_s8, [#allocation3], %s1159_s1, %s1159_s1, %s1160_s17  }
  0x24   :  { %s1161_s20 = smov [#allocation7]   ;;  %s1105_s24 = scalar_lea.hbm %s1361_s3, 3072 }
  0x25   :  { %s44_s21 = sshll.u32 %s1161_s20, 4  ;;  %p1106_p2 = scmp.ne.s32.totalorder %s1361_s3, %s1105_s24  ;;  %s45_s21 = int_to_ptr.vmem [resolvable:$true] %s44_s21 }
  0x26   :  { %p1109_p3 = scmp.lt.u32.totalorder %s1105_s24, %s1361_s3 }
  0x28   :  { %p1111_p4 = pnand %p1109_p3, %p1106_p2 }
  0x2a   :  { %1114 = shalt.err (!%p1111_p4)
}
  0x2b   :  { %s1115_s6 = scalar_lea.vmem %s45_s21, 3072  ;;  %p1120_p6 = scmp.lt.s32.totalorder %s45_s21, %s45_s21 }
  0x2c   :  { %p1116_p5 = scmp.ne.s32.totalorder %s45_s21, %s1115_s6  ;;  %p1121_p7 = scmp.lt.s32.totalorder %s1115_s6, %s1115_s6 }
  0x2e   :  { %p1122_p8 = por %p1121_p7, %p1120_p6 }
  0x30   :  { %p1123_p9 = pnand %p1122_p8, %p1116_p5 }
  0x32   :  { %1126 = shalt.err (!%p1123_p9)
}
  0x33   :  { %50 = dma.hbm_to_vmem [thread:$0]  %s1361_s3, 3072, %s45_s21, [#allocation6], %s1156_s28, %s1156_s28, %s1157_s29  }
  0x34   :  { %1149 = dma.done.wait [#allocation3], 512  }
  0x35   :  { %1150 = vsyncadd [#allocation3], 4294966784 }
  0x36   :  { %1151 = dma.done.wait [#allocation6], 6144  }
  0x37   :  { %1152 = vsyncadd [#allocation6], 4294961152  ;;  %v1013_v0 = vld [vmem:[#allocation5 + $0x40] sm:$0xff]   ;;  %v1015_v2 = vld [vmem:[#allocation5 + $0x48] sm:$0xff]   ;;  %v67_v3 = vlaneseq  ;;  %v1162_v32 = vmov 0.0  }
  0x38   :  { %v1014_v1 = vld [vmem:[#allocation5] sm:$0xff]   ;;  %888 = vmatprep.subr.bf16.mxu0 %v1013_v0  ;;  %v1017_v5 = vld [vmem:[#allocation5 + $0x8] sm:$0xff]   ;;  %v1018_v6 = vld [vmem:[#allocation5 + $0x50] sm:$0xff]  }
  0x39   :  { %889 = vmatpush3.bf16.msra.mxu0 %v1014_v1  ;;  %v1016_v4 = vld [vmem:[#allocation5 + $0x80] sm:$0xff]   ;;  %v1019_v7 = vld [vmem:[#allocation5 + $0x88] sm:$0xff]   ;;  %v1239_v8 = vshrl.u32 %v67_v3, 7  ;;  %v1020_v9 = vld [vmem:[#allocation5 + $0x10] sm:$0xff]  }
  0x3a   :  { %890 = vmatprep.subr.bf16.mxu0 %v1015_v2  ;;  %964 = vmatprep.subr.bf16.mxu1 %v1016_v4  ;;  %v1021_v10 = vld [vmem:[#allocation5 + $0x58] sm:$0xff]   ;;  %v1022_v11 = vld [vmem:[#allocation5 + $0x90] sm:$0xff]   ;;  %v1024_v14 = vld [vmem:[#allocation5 + $0x60] sm:$0xff]  }
  0x3b   :  { %965 = vmatpush3.bf16.msra.mxu1 %v1016_v4  ;;  %v1023_v12 = vld [vmem:[#allocation5 + $0x18] sm:$0xff]   ;;  %v69_v13 = vadd.s32 8, %v1239_v8  ;;  %v71_v16 = vadd.s32 24, %v1239_v8  ;;  %v76_v17 = vand.u32 15, %v1239_v8  ;;  %v1026_v18 = vld [vmem:[#allocation5 + $0x20] sm:$0xff]   ;;  %v70_v21 = vadd.s32 16, %v1239_v8 }
  0x3c   :  { %966 = vmatprep.subr.bf16.mxu1 %v1019_v7  ;;  %v1025_v15 = vld [vmem:[#allocation5 + $0x98] sm:$0xff]   ;;  %v1028_v20 = vld [vmem:[#allocation5 + $0xa0] sm:$0xff]   ;;  %v1027_v22 = vld [vmem:[#allocation5 + $0x68] sm:$0xff]   ;;  %vm149_vm1 = vcmp.lt.s32.totalorder %v1239_v8, 1  ;;  %vm164_vm4 = vcmp.lt.s32.totalorder %v1239_v8, 7 }
  0x3d   :  { %891 = vmatpush3.bf16.msra.mxu0 %v1017_v5  ;;  %v83_v19 = vand.u32 15, %v69_v13  ;;  %v97_v23 = vand.u32 15, %v71_v16  ;;  %vm1245_vm0 = vcmp.ne.s32.totalorder %v76_v17, 0  ;;  %v1029_v25 = vld [vmem:[#allocation5 + $0x28] sm:$0xff]   ;;  %v90_v28 = vand.u32 15, %v70_v21  ;;  %v1030_v29 = vld [vmem:[#allocation5 + $0x70] sm:$0xff]  }
  0x3e   :  { %892 = vmatprep.subr.bf16.mxu0 %v1018_v6  ;;  %v1031_v27 = vld [vmem:[#allocation5 + $0xa8] sm:$0xff]   ;;  %v1032_v30 = vld [vmem:[#allocation5 + $0x30] sm:$0xff]   ;;  %v1257_v33 = vsel %vm1245_vm0, 1.0, %v1162_v32  ;;  %v1259_v34 = vld [vmem:[#allocation2] sm:$0xff] }
  0x3f   :  { %967 = vmatpush3.bf16.msra.mxu1 %v1019_v7  ;;  %vm1250_vm2 = vcmp.ne.s32.totalorder %v83_v19, 15  ;;  %vm135_vm3 = vcmp.ne.s32.totalorder %v97_v23, 15  ;;  %v1034_v31 = vld [vmem:[#allocation5 + $0xb0] sm:$0xff]   ;;  %v1261_v35 = vld [vmem:[#allocation2 + $0x8] sm:$0xff]  ;;  %v1263_v36 = vld [vmem:[#allocation2 + $0x18] sm:$0xff]  ;;  %vm1271_vm5 = vcmp.ne.s32.totalorder %v90_v28, 0 }
  0x40   :  { %968 = vmatprep.subr.bf16.mxu1 %v1022_v11  ;;  %v1267_v37 = vsel %vm1250_vm2, 1.0, %v1162_v32  ;;  %v1269_v38 = vsel %vm135_vm3, 1.0, %v1162_v32  ;;  %v1033_v40 = vld [vmem:[#allocation5 + $0x78] sm:$0xff]   ;;  %v145_v41 = vrot.slane %v1259_v34, 7  ;;  %v146_v42 = vrot.slane %v1261_v35, 7  ;;  %v1280_v45 = vld [vmem:[#allocation2 + $0x10] sm:$0xff] }
  0x41   :  { %893 = vmatpush3.bf16.msra.mxu0 %v1020_v9  ;;  %v175_v43 = vpack.c.bf16 %v1261_v35, %v1259_v34  ;;  %v148_v44 = vrot.slane %v1263_v36, 7  ;;  %v160_v46 = vrot.slane %v1259_v34, 1  ;;  %v161_v47 = vrot.slane %v1261_v35, 1  ;;  %v1035_v49 = vld [vmem:[#allocation5 + $0x38] sm:$0xff]   ;;  %v1037_v59 = vld [vmem:[#allocation7 + $0x40] sm:$0xff]   ;;  %v1040_v6 = vld [vmem:[#allocation7 + $0x48] sm:$0xff]  }
  0x42   :  { %894 = vmatprep.subr.bf16.mxu0 %v1021_v10  ;;  %v163_v48 = vrot.slane %v1263_v36, 1  ;;  %v162_v51 = vrot.slane %v1280_v45, 1  ;;  %v152_v52 = vsel %vm149_vm1, %v145_v41, %v146_v42  ;;  %v1036_v54 = vld [vmem:[#allocation5 + $0xb8] sm:$0xff]   ;;  %v147_v56 = vrot.slane %v1280_v45, 7  ;;  %v1038_v62 = vld [vmem:[#allocation7 + $0x80] sm:$0xff]   ;;  %v1041_v9 = vld [vmem:[#allocation7 + $0x88] sm:$0xff]  }
  0x43   :  { %969 = vmatpush3.bf16.msra.mxu1 %v1022_v11  ;;  %407 = vmatprep.mubr.bf16.mxu0 %v175_v43  ;;  %v153_v50 = vsel %vm149_vm1, %v148_v44, %v145_v41  ;;  %v167_v58 = vsel %vm164_vm4, %v160_v46, %v161_v47  ;;  %v1304_v1 = vsel %vm1271_vm5, 1.0, %v1162_v32  ;;  %v1039_v2 = vld [vmem:[#allocation7] sm:$0xff]   ;;  %v176_v4 = vpack.c.bf16 %v1263_v36, %v1280_v45  ;;  %v1042_v13 = vld [vmem:[#allocation7 + $0x8] sm:$0xff]   ;;  %v1045_v16 = vld [vmem:[#allocation7 + $0x10] sm:$0xff]  }
  0x44   :  { %970 = vmatprep.subr.bf16.mxu1 %v1025_v15  ;;  %v154_v53 = vmul.f32 %v1257_v33, %v153_v50  ;;  %v168_v55 = vsel %vm164_vm4, %v163_v48, %v160_v46  ;;  %v166_v57 = vsel %vm164_vm4, %v161_v47, %v162_v51  ;;  %v165_v0 = vsel %vm164_vm4, %v162_v51, %v163_v48  ;;  %v1046_v17 = vld [vmem:[#allocation7 + $0x58] sm:$0xff]   ;;  %v1050_v21 = vld [vmem:[#allocation7 + $0xa0] sm:$0xff]   ;;  %v1052_v23 = vld [vmem:[#allocation7 + $0x68] sm:$0xff]  }
  0x45   :  { %895 = vmatpush3.bf16.msra.mxu0 %v1023_v12  ;;  %v170_v60 = vmul.f32 %v1267_v37, %v166_v57  ;;  %v172_v61 = vmul.f32 %v1269_v38, %v168_v55  ;;  %v151_v5 = vsel %vm149_vm1, %v146_v42, %v147_v56  ;;  %v150_v11 = vsel %vm149_vm1, %v147_v56, %v148_v44  ;;  %v1048_v19 = vld [vmem:[#allocation7 + $0x18] sm:$0xff]   ;;  %v1053_v24 = vld [vmem:[#allocation7 + $0xa8] sm:$0xff]   ;;  %v1055_v26 = vld [vmem:[#allocation7 + $0x70] sm:$0xff]  }
  0x46   :  { %896 = vmatprep.subr.bf16.mxu0 %v1024_v14  ;;  %v158_v63 = vpack.c.bf16 %v152_v52, %v154_v53  ;;  %v156_v10 = vmul.f32 %v1304_v1, %v151_v5  ;;  %v1043_v14 = vld [vmem:[#allocation7 + $0x50] sm:$0xff]   ;;  %v863_v8 = vld [vmem:[%s1362_s4] ss:$0 sm:$0xff]  ;;  %s1163_s4 = smov [#allocation8]  }
  0x47   :  { %971 = vmatpush3.bf16.msra.mxu1 %v1025_v15  ;;  %v173_v3 = vpack.c.bf16 %v170_v60, %v167_v58  ;;  %v174_v7 = vpack.c.bf16 %v172_v61, %v165_v0  ;;  %v1044_v15 = vld [vmem:[#allocation7 + $0x90] sm:$0xff]   ;;  %s821_s8 = sshll.u32 %s1163_s4, 4  ;;  %s822_s8 = int_to_ptr.vmem [resolvable:$true] %s821_s8 }
  0x48   :  { %972 = vmatprep.subr.bf16.mxu1 %v1028_v20  ;;  %v159_v12 = vpack.c.bf16 %v150_v11, %v156_v10  ;;  %v1057_v28 = vld [vmem:[#allocation7 + $0x30] sm:$0xff]   ;;  %s1127_s9 = scalar_lea.vmem %s822_s8, 512  ;;  %p1132_p11 = scmp.lt.s32.totalorder %s822_s8, %s822_s8 }
  0x49   :  { %897 = vmatpush3.bf16.msra.mxu0 %v1026_v18  ;;  %980 = vmatprep.mubr.bf16.mxu1 %v173_v3  ;;  %v1047_v18 = vld [vmem:[#allocation7 + $0x98] sm:$0xff]   ;;  %p1128_p10 = scmp.ne.s32.totalorder %s822_s8, %s1127_s9  ;;  %p1133_p12 = scmp.lt.s32.totalorder %s1127_s9, %s1127_s9 }
  0x4a   :  { %898 = vmatprep.subr.bf16.mxu0 %v1027_v22  ;;  %v1051_v22 = vld [vmem:[#allocation7 + $0x20] sm:$0xff]  }
  0x4b   :  { %973 = vmatpush3.bf16.msra.mxu1 %v1028_v20  ;;  %v1049_v20 = vld [vmem:[#allocation7 + $0x60] sm:$0xff]   ;;  %p1134_p13 = por %p1133_p12, %p1132_p11 }
  0x4c   :  { %974 = vmatprep.subr.bf16.mxu1 %v1031_v27 }
  0x4d   :  { %899 = vmatpush3.bf16.msra.mxu0 %v1029_v25  ;;  %v1054_v25 = vld [vmem:[#allocation7 + $0x28] sm:$0xff]   ;;  %p1135_p0 = pnand %p1134_p13, %p1128_p10 }
  0x4e   :  { %900 = vmatprep.subr.bf16.mxu0 %v1030_v29  ;;  %v1058_v29 = vld [vmem:[#allocation7 + $0x78] sm:$0xff]  }
  0x4f   :  { %975 = vmatpush3.bf16.msra.mxu1 %v1031_v27  ;;  %v1056_v27 = vld [vmem:[#allocation7 + $0xb0] sm:$0xff]  }
  0x50   :  { %976 = vmatprep.subr.bf16.mxu1 %v1034_v31 }
  0x51   :  { %901 = vmatpush3.bf16.msra.mxu0 %v1032_v30  ;;  %v1059_v30 = vld [vmem:[#allocation7 + $0xb8] sm:$0xff]  }
  0x52   :  { %902 = vmatprep.subr.bf16.mxu0 %v1033_v40  ;;  %v838_v40 = vld [vmem:[%s1360_s2] ss:$0 sm:$0xff] }
  0x53   :  { %977 = vmatpush3.bf16.msra.mxu1 %v1034_v31  ;;  %v1060_v31 = vld [vmem:[#allocation7 + $0x38] sm:$0xff]  }
  0x54   :  { %978 = vmatprep.subr.bf16.mxu1 %v1036_v54 }
  0x55   :  { %903 = vmatpush3.bf16.msra.mxu0 %v1035_v49 }
  0x56   :  { %926 = vmatprep.subr.bf16.mxu0 %v1037_v59 }
  0x57   :  { %979 = vmatpush3.bf16.msra.mxu1 %v1036_v54 }
  0x58   :  { %408 = vmatmul.mubr.bf16.vlgmr.msra.gmra.mrb[0].mxu0 %v158_v63  ;;  %984 = vmatprep.subr.bf16.mxu1 %v1038_v62 }
  0x59   :  { %415 = vmatprep.mubr.bf16.mxu0 %v176_v4  ;;  %927 = vmatpush3.bf16.msra.mxu0 %v1039_v2 }
  0x5a   :  { %981 = vmatmul.mubr.bf16.vlgmr.msra.gmra.mrb[0].mxu1 %v174_v7  ;;  %928 = vmatprep.subr.bf16.mxu0 %v1040_v6 }
  0x5b   :  { %985 = vmatpush3.bf16.msra.mxu1 %v1038_v62 }
  0x5c   :  { %986 = vmatprep.subr.bf16.mxu1 %v1041_v9 }
  0x5d   :  { %929 = vmatpush3.bf16.msra.mxu0 %v1042_v13 }
  0x5e   :  { %930 = vmatprep.subr.bf16.mxu0 %v1043_v14 }
  0x5f   :  { %987 = vmatpush3.bf16.msra.mxu1 %v1041_v9 }
  0x60   :  { %416 = vmatmul.mubr.bf16.gmra.mrb[4].mxu0 %v159_v12  ;;  %988 = vmatprep.subr.bf16.mxu1 %v1044_v15 }
  0x61   :  { %931 = vmatpush3.bf16.msra.mxu0 %v1045_v16 }
  0x62   :  { %932 = vmatprep.subr.bf16.mxu0 %v1046_v17 }
  0x63   :  { %989 = vmatpush3.bf16.msra.mxu1 %v1044_v15 }
  0x64   :  { %990 = vmatprep.subr.bf16.mxu1 %v1047_v18 }
  0x65   :  { %933 = vmatpush3.bf16.msra.mxu0 %v1048_v19 }
  0x66   :  { %934 = vmatprep.subr.bf16.mxu0 %v1049_v20 }
  0x67   :  { %991 = vmatpush3.bf16.msra.mxu1 %v1047_v18 }
  0x68   :  { %992 = vmatprep.subr.bf16.mxu1 %v1050_v21 }
  0x69   :  { %935 = vmatpush3.bf16.msra.mxu0 %v1051_v22 }
  0x6a   :  { %936 = vmatprep.subr.bf16.mxu0 %v1052_v23 }
  0x6b   :  { %993 = vmatpush3.bf16.msra.mxu1 %v1050_v21 }
  0x6c   :  { %994 = vmatprep.subr.bf16.mxu1 %v1053_v24 }
  0x6d   :  { %937 = vmatpush3.bf16.msra.mxu0 %v1054_v25 }
  0x6e   :  { %938 = vmatprep.subr.bf16.mxu0 %v1055_v26 }
  0x6f   :  { %995 = vmatpush3.bf16.msra.mxu1 %v1053_v24 }
  0x70   :  { %996 = vmatprep.subr.bf16.mxu1 %v1056_v27 }
  0x71   :  { %939 = vmatpush3.bf16.msra.mxu0 %v1057_v28 }
  0x72   :  { %940 = vmatprep.subr.bf16.mxu0 %v1058_v29 }
  0x73   :  { %997 = vmatpush3.bf16.msra.mxu1 %v1056_v27 }
  0x74   :  { %998 = vmatprep.subr.bf16.mxu1 %v1059_v30 }
  0x75   :  { %941 = vmatpush3.bf16.msra.mxu0 %v1060_v31 }
  0x77   :  { %999 = vmatpush3.bf16.msra.mxu1 %v1059_v30 }
 0x12b   :  { %v904_v32 = vpop.f32.mrb[0].mxu0 }
 0x12c   :  { %v905_v39 = vpop.f32.mrb[1].mxu0 }
 0x12d   :  { %v906_v41 = vadd.f32 %v905_v39, %v904_v32  ;;  %v907_v42 = vpop.f32.mrb[2].mxu0  ;;  %v982_v44 = vpop.f32.mrb[0].mxu1 }
 0x12e   :  { %v908_v43 = vpop.f32.mrb[3].mxu0  ;;  %v458_v48 = vpop.f32.mrb[1].mxu1 }
 0x12f   :  { %v909_v46 = vadd.f32 %v908_v43, %v907_v42  ;;  %v410_v47 = vadd.f32 %v906_v41, %v838_v40  ;;  %v983_v49 = vpop.f32.mrb[2].mxu1 }
 0x130   :  { %v461_v52 = vpop.f32.mrb[3].mxu1 }
 0x131   :  { %v459_v50 = vadd.f32 %v458_v48, %v410_v47  ;;  %v413_v51 = vadd.f32 %v909_v46, %v838_v40 }
 0x133   :  { %v473_v53 = vmax.f32 %v459_v50, 0.0  ;;  %v462_v54 = vadd.f32 %v461_v52, %v413_v51  ;;  %v910_v55 = vpop.f32.mrb[4].mxu0 }
 0x134   :  { %v911_v56 = vpop.f32.mrb[5].mxu0 }
 0x135   :  { %v474_v57 = vmax.f32 %v462_v54, 0.0  ;;  %v912_v58 = vadd.f32 %v911_v56, %v910_v55  ;;  %v913_v59 = vpop.f32.mrb[6].mxu0  ;;  %v478_v60 = vrot.slane %v473_v53, 7  ;;  %v492_v61 = vrot.slane %v473_v53, 1 }
 0x136   :  { %v914_v62 = vpop.f32.mrb[7].mxu0 }
 0x137   :  { %v479_v63 = vrot.slane %v474_v57, 7  ;;  %v493_v0 = vrot.slane %v474_v57, 1  ;;  %v418_v2 = vadd.f32 %v912_v58, %v838_v40  ;;  %v915_v3 = vadd.f32 %v914_v62, %v913_v59 }
 0x138   :  { %v506_v4 = vpack.c.bf16 %v474_v57, %v473_v53 }
 0x139   :  { %v484_v5 = vsel %vm149_vm1, %v478_v60, %v479_v63  ;;  %v467_v6 = vadd.f32 %v982_v44, %v418_v2  ;;  %v421_v7 = vadd.f32 %v915_v3, %v838_v40  ;;  %v498_v9 = vsel %vm164_vm4, %v492_v61, %v493_v0 }
 0x13a   :  { %738 = vmatprep.mubr.bf16.mxu0 %v506_v4 }
 0x13b   :  { %v475_v10 = vmax.f32 %v467_v6, 0.0  ;;  %v470_v11 = vadd.f32 %v983_v49, %v421_v7 }
 0x13d   :  { %v494_v12 = vrot.slane %v475_v10, 1  ;;  %v476_v13 = vmax.f32 %v470_v11, 0.0  ;;  %v480_v14 = vrot.slane %v475_v10, 7 }
 0x13f   :  { %v481_v15 = vrot.slane %v476_v13, 7  ;;  %v495_v16 = vrot.slane %v476_v13, 1  ;;  %v497_v17 = vsel %vm164_vm4, %v493_v0, %v494_v12  ;;  %v507_v18 = vpack.c.bf16 %v476_v13, %v475_v10 }
 0x140   :  { %v501_v19 = vmul.f32 %v1267_v37, %v497_v17  ;;  %v483_v20 = vsel %vm149_vm1, %v479_v63, %v480_v14 }
 0x141   :  { %v485_v21 = vsel %vm149_vm1, %v481_v15, %v478_v60  ;;  %v496_v22 = vsel %vm164_vm4, %v494_v12, %v495_v16  ;;  %v499_v23 = vsel %vm164_vm4, %v495_v16, %v492_v61  ;;  %v482_v24 = vsel %vm149_vm1, %v480_v14, %v481_v15 }
 0x142   :  { %v504_v25 = vpack.c.bf16 %v501_v19, %v498_v9  ;;  %v486_v26 = vmul.f32 %v1257_v33, %v485_v21  ;;  %v503_v37 = vmul.f32 %v1269_v38, %v499_v23  ;;  %v488_v27 = vmul.f32 %v1304_v1, %v483_v20 }
 0x144   :  { %1000 = vmatprep.mubr.bf16.mxu1 %v504_v25  ;;  %v490_v28 = vpack.c.bf16 %v484_v5, %v486_v26  ;;  %v505_v29 = vpack.c.bf16 %v503_v37, %v496_v22  ;;  %v491_v30 = vpack.c.bf16 %v482_v24, %v488_v27 }
 0x146   :  { %739 = vmatmul.mubr.bf16.vlgmr.msra.gmra.mrb[8].mxu0 %v490_v28  ;;  %1001 = vmatmul.mubr.bf16.vlgmr.msra.gmra.mrb[4].mxu1 %v505_v29 }
 0x147   :  { %746 = vmatprep.mubr.bf16.mxu0 %v507_v18 }
 0x14e   :  { %747 = vmatmul.mubr.bf16.gmra.mrb[12].mxu0 %v491_v30 }
 0x219   :  { %v942_v31 = vpop.f32.mrb[8].mxu0  ;;  %v1002_v32 = vpop.f32.mrb[4].mxu1 }
 0x21a   :  { %v943_v39 = vpop.f32.mrb[9].mxu0  ;;  %v789_v33 = vpop.f32.mrb[5].mxu1 }
 0x21b   :  { %v944_v40 = vadd.f32 %v943_v39, %v942_v31  ;;  %v945_v38 = vpop.f32.mrb[10].mxu0  ;;  %v1003_v41 = vpop.f32.mrb[6].mxu1 }
 0x21c   :  { %v946_v1 = vpop.f32.mrb[11].mxu0  ;;  %v792_v42 = vpop.f32.mrb[7].mxu1 }
 0x21d   :  { %v741_v43 = vadd.f32 %v944_v40, %v863_v8  ;;  %v947_v44 = vadd.f32 %v946_v1, %v945_v38 }
 0x21f   :  { %v790_v46 = vadd.f32 %v789_v33, %v741_v43  ;;  %v744_v47 = vadd.f32 %v947_v44, %v863_v8 }
 0x221   :  { %v804_v48 = vadd.f32 %v790_v46, %v1259_v34  ;;  %v793_v49 = vadd.f32 %v792_v42, %v744_v47  ;;  %v948_v50 = vpop.f32.mrb[12].mxu0 }
 0x222   :  { %v949_v51 = vpop.f32.mrb[13].mxu0 }
 0x223   :  { %v808_v52 = vmax.f32 %v804_v48, 0.0  ;;  %v805_v53 = vadd.f32 %v793_v49, %v1261_v35  ;;  %v950_v54 = vadd.f32 %v949_v51, %v948_v50  ;;  %v951_v55 = vpop.f32.mrb[14].mxu0 }
 0x224   :  { %v952_v56 = vpop.f32.mrb[15].mxu0 }
 0x225   :  { %812 = vst [vmem:[#allocation8] sm:$0xff] %v808_v52  ;;  %v809_v57 = vmax.f32 %v805_v53, 0.0  ;;  %v749_v58 = vadd.f32 %v950_v54, %v863_v8  ;;  %v953_v59 = vadd.f32 %v952_v56, %v951_v55 }
 0x227   :  { %813 = vst [vmem:[#allocation8 + $0x8] sm:$0xff] %v809_v57  ;;  %v798_v60 = vadd.f32 %v1002_v32, %v749_v58  ;;  %v752_v61 = vadd.f32 %v953_v59, %v863_v8 }
 0x229   :  { %v806_v62 = vadd.f32 %v798_v60, %v1280_v45  ;;  %v801_v63 = vadd.f32 %v1003_v41, %v752_v61 }
 0x22b   :  { %v810_v34 = vmax.f32 %v806_v62, 0.0  ;;  %v807_v0 = vadd.f32 %v801_v63, %v1263_v36 }
 0x22d   :  { %814 = vst [vmem:[#allocation8 + $0x10] sm:$0xff] %v810_v34  ;;  %v811_v35 = vmax.f32 %v807_v0, 0.0 }
 0x22f   :  { %815 = vst [vmem:[#allocation8 + $0x18] sm:$0xff] %v811_v35 }
 0x230   :  { %1138 = shalt.err (!%p1135_p0)
}
 0x231   :  { %s1139_s12 = scalar_lea.hbm %s1363_s5, 512 }
 0x232   :  { %p1140_p1 = scmp.ne.s32.totalorder %s1363_s5, %s1139_s12  ;;  %p1143_p2 = scmp.lt.u32.totalorder %s1139_s12, %s1363_s5 }
 0x234   :  { %p1145_p3 = pnand %p1143_p2, %p1140_p1 }
 0x236   :  { %1148 = shalt.err (!%p1145_p3)
}
 0x237   :  { %827 = dma.vmem_to_hbm [thread:$0]  %s822_s8, 512, %s1363_s5, [#allocation4], %s1159_s1, %s1159_s1, %s1160_s17  }
 0x238   :  { %1153 = dma.done.wait [#allocation4], 512  }
 0x239   :  { %1154 = vsyncadd [#allocation4], 4294966784 }
 0x23a   :  { %831 = vsyncpa [#allocation3], 1 }
 0x23b   :  { %832 = vsyncpa [#allocation6], 1 }
 0x23c   :  { %833 = vsyncpa [#allocation4], 1 }

</bundles_post_ra>
